<compile_context>
chip_gen: v7x
topology: tpu7x:2x2x1
jax: 0.10.0
libtpu: 0.0.40
codegen_flags: <defaults>
</compile_context>

<pallas_src>
import jax
import jax.numpy as jnp
from jax.experimental import pallas as pl
from jax.experimental.pallas import tpu as pltpu


def _se_kernel(xse_ref, w41t_ref, b41_ref, w42_ref, x_ref, out_ref):
    # xse_ref : [1, C_se]        squeezed input (x127)
    # w41t_ref: [C_se, C_mid]    conv2d41 weight, transposed
    # b41_ref : [1, C_mid]       conv2d41 bias
    # w42_ref : [C_out, C_mid]   conv2d42 weight
    # x_ref   : [C_mid, TC]      column tile of x124 (channel-major)
    # out_ref : [C_out, TC]      column tile of the output

    # Squeeze conv (1x1, C_se -> C_mid) + bias + sigmoid -> per-channel gate.
    logits = jnp.dot(
        xse_ref[...].astype(jnp.float32),
        w41t_ref[...].astype(jnp.float32),
        preferred_element_type=jnp.float32,
    ) + b41_ref[...].astype(jnp.float32)
    scale = jax.nn.sigmoid(logits)                       # [1, C_mid], f32

    # Fold the gate into the second conv's weight (exact: no nonlinearity
    # between the multiply and conv2d42). Cast back to the activation dtype so
    # bf16 activations get bf16 MXU operands; accumulation stays f32 below.
    w_eff = (w42_ref[...].astype(jnp.float32) * scale).astype(x_ref.dtype)

    # conv2d42 (1x1, no bias) as a matmul: [C_out, C_mid] @ [C_mid, TC].
    out_ref[...] = jnp.dot(
        w_eff, x_ref[...], preferred_element_type=jnp.float32
    ).astype(out_ref.dtype)


def se_block(x127, x124, w41, b41, w42, *, col_tile=None):
    """x127: [1,C_se,1,1], x124: [1,C_mid,H,W], w41: [C_mid,C_se,1,1],
    b41: [C_mid], w42: [C_out,C_mid,1,1] -> [1,C_out,H,W]"""
    N, C_mid, H, W = x124.shape
    C_se = x127.shape[1]
    C_out = w42.shape[0]
    assert N == 1, "kernel assumes batch 1 (matches the reference module)"

    HW = H * W
    act_bytes = jnp.dtype(x124.dtype).itemsize
    par_bytes = jnp.dtype(w42.dtype).itemsize

    # Channel-major views: pure reshapes for N=1 (no HBM transpose passes).
    x_cols = x124.reshape(C_mid, HW)
    xse = x127.reshape(1, C_se)
    w41t = w41.reshape(C_mid, C_se).T          # [C_se, C_mid]
    b41_row = b41.reshape(1, C_mid)
    w42_m = w42.reshape(C_out, C_mid)          # [C_out, C_mid]

    # -------- Column-tile selection (adaptive, perf-review change) --------
    # Bytes per column that must live in VMEM (double-buffered x tile and
    # double-buffered out tile).
    per_col_bytes = 2 * (C_mid + C_out) * act_bytes
    # Keep the streamed tiles well under v7x's 64 MiB physical VMEM.
    tile_budget = 40 << 20
    max_tc_by_budget = max(128, (tile_budget // per_col_bytes) // 128 * 128)

    if col_tile is not None:
        tc = min(col_tile, HW)
    else:
        tc = min(8192, max_tc_by_budget, HW)
    if tc < HW:
        tc = max(128, (tc // 128) * 128)       # 128-multiple => (8,128) rule ok

    # Guarantee >=2 grid steps when the activation is large enough: engages
    # v7x's second TensorCore ("parallel" axis) and keeps DMA/compute overlap.
    if tc >= HW and HW >= 256:
        half = (HW + 1) // 2
        tc = max(128, ((half + 127) // 128) * 128)

    grid = (pl.cdiv(HW, tc),)

    # -------- Explicit VMEM budget from the actual footprint --------
    tile_bytes = 2 * C_mid * tc * act_bytes + 2 * C_out * tc * act_bytes
    weight_bytes = 2 * (C_se + C_se * C_mid + C_mid + C_out * C_mid) * par_bytes
    vmem_limit = int(tile_bytes * 1.5) + weight_bytes + (4 << 20)
    vmem_limit = min(max(vmem_limit, 32 << 20), 60 << 20)

    cost = pl.CostEstimate(
        flops=2 * C_mid * C_out * HW + 2 * C_se * C_mid + C_out * C_mid,
        transcendentals=C_mid,
        bytes_accessed=act_bytes * HW * (C_mid + C_out)
        + par_bytes * (C_se + C_se * C_mid + C_mid + C_out * C_mid),
    )

    out_cols = pl.pallas_call(
        _se_kernel,
        out_shape=jax.ShapeDtypeStruct((C_out, HW), x124.dtype),
        grid=grid,
        in_specs=[
            pl.BlockSpec((1, C_se), lambda j: (0, 0)),        # resident
            pl.BlockSpec((C_se, C_mid), lambda j: (0, 0)),    # resident
            pl.BlockSpec((1, C_mid), lambda j: (0, 0)),       # resident
            pl.BlockSpec((C_out, C_mid), lambda j: (0, 0)),   # resident
            pl.BlockSpec((C_mid, tc), lambda j: (0, j)),      # streamed
        ],
        out_specs=pl.BlockSpec((C_out, tc), lambda j: (0, j)),
        compiler_params=pltpu.CompilerParams(
            dimension_semantics=("parallel",),
            vmem_limit_bytes=vmem_limit,
        ),
        cost_estimate=cost,
    )(xse, w41t, b41_row, w42_m, x_cols)

    return out_cols.reshape(N, C_out, H, W)


def _reference(x127, x124, w41, b41, w42):
    # Plain-JAX f32 reference of the same math for verification.
    C_mid = x124.shape[1]
    C_se = x127.shape[1]
    C_out = w42.shape[0]
    x127f = x127.astype(jnp.float32)
    x124f = x124.astype(jnp.float32)
    w41f = w41.astype(jnp.float32)
    b41f = b41.astype(jnp.float32)
    w42f = w42.astype(jnp.float32)
    s = jnp.dot(w41f.reshape(C_mid, C_se), x127f.reshape(C_se)) + b41f  # [C_mid]
    s = jax.nn.sigmoid(s)
    gated = x124f * s.reshape(1, C_mid, 1, 1)
    return jnp.einsum("oc,nchw->nohw", w42f.reshape(C_out, C_mid), gated)


if __name__ == "__main__":
    # Channel sizes are dictated by the module (10 -> 240 -> 40).
    N, C_se, C_mid, C_out = 1, 10, 240, 40

    key = jax.random.PRNGKey(0)
    k1, k2, k3, k4, k5 = jax.random.split(key, 5)

    # Deterministic synthetic parameters (shapes from the module __init__).
    w41 = 0.1 * jax.random.normal(k3, (C_mid, C_se, 1, 1), dtype=jnp.float32)
    b41 = 0.1 * jax.random.normal(k4, (C_mid,), dtype=jnp.float32)
    w42 = 0.1 * jax.random.normal(k5, (C_out, C_mid, 1, 1), dtype=jnp.float32)

    run = jax.jit(se_block, static_argnames=("col_tile",))

    # Case 1: f32, evenly tiled columns (H*W = 256, two 128-wide tiles).
    H, W = 16, 16
    x127 = jax.random.normal(k1, (N, C_se, 1, 1), dtype=jnp.float32)
    x124 = jax.random.normal(k2, (N, C_mid, H, W), dtype=jnp.float32)
    out = jax.block_until_ready(run(x127, x124, w41, b41, w42, col_tile=128))
    ref = _reference(x127, x124, w41, b41, w42)
    assert out.shape == (N, C_out, H, W), out.shape
    assert jnp.allclose(out, ref, atol=1e-4, rtol=1e-4), float(
        jnp.max(jnp.abs(out - ref))
    )

    # Case 2: f32, ragged final tile (H*W = 144 with 128-wide tiles).
    H2, W2 = 12, 12
    x124b = jax.random.normal(
        jax.random.PRNGKey(1), (N, C_mid, H2, W2), dtype=jnp.float32
    )
    out2 = jax.block_until_ready(run(x127, x124b, w41, b41, w42, col_tile=128))
    ref2 = _reference(x127, x124b, w41, b41, w42)
    assert out2.shape == (N, C_out, H2, W2), out2.shape
    assert jnp.allclose(out2, ref2, atol=1e-4, rtol=1e-4), float(
        jnp.max(jnp.abs(out2 - ref2))
    )

    # Case 3: bf16 activations at the module's real spatial extent (56x56),
    # adaptive column tile (exercises the >=2-step split + explicit VMEM budget).
    H3, W3 = 56, 56
    x127c = x127.astype(jnp.bfloat16)
    x124c = jax.random.normal(
        jax.random.PRNGKey(2), (N, C_mid, H3, W3), dtype=jnp.float32
    ).astype(jnp.bfloat16)
    out3 = jax.block_until_ready(run(x127c, x124c, w41, b41, w42))
    ref3 = _reference(x127c, x124c, w41, b41, w42)
    assert out3.shape == (N, C_out, H3, W3), out3.shape
    assert jnp.allclose(
        out3.astype(jnp.float32), ref3, atol=5e-2, rtol=5e-2
    ), float(jnp.max(jnp.abs(out3.astype(jnp.float32) - ref3)))

    print("KERNEL_OK")
</pallas_src>

<mosaic_0001>
module attributes {stable_mosaic.version = 11 : i64} {
  func.func @_se_kernel(%arg0: i32, %arg1: memref<1x10xf32, #tpu.memory_space<vmem>>, %arg2: memref<10x240xf32, #tpu.memory_space<vmem>>, %arg3: memref<1x240xf32, #tpu.memory_space<vmem>>, %arg4: memref<40x240xf32, #tpu.memory_space<vmem>>, %arg5: memref<240x128xf32, #tpu.memory_space<vmem>>, %arg6: memref<40x128xf32, #tpu.memory_space<vmem>>) attributes {dimension_semantics = [#tpu.dimension_semantics<parallel>], iteration_bounds = array<i64: 2>, scalar_prefetch = 0 : i64, scratch_operands = 0 : i64, tpu.core_type = #tpu.core_type<tc>, window_params = [{pipeline_mode = #tpu.pipeline_mode<synchronous>, transform_indices = @transform_0, window_bounds = array<i64: 1, 10>}, {pipeline_mode = #tpu.pipeline_mode<synchronous>, transform_indices = @transform_1, window_bounds = array<i64: 10, 240>}, {pipeline_mode = #tpu.pipeline_mode<synchronous>, transform_indices = @transform_2, window_bounds = array<i64: 1, 240>}, {pipeline_mode = #tpu.pipeline_mode<synchronous>, transform_indices = @transform_3, window_bounds = array<i64: 40, 240>}, {transform_indices = @transform_4, window_bounds = array<i64: 240, 128>}, {transform_indices = @transform_5, window_bounds = array<i64: 40, 128>}]} {
    %c0 = arith.constant 0 : index
    %c0_0 = arith.constant 0 : index
    %0 = vector.load %arg1[%c0, %c0_0] : memref<1x10xf32, #tpu.memory_space<vmem>>, vector<1x10xf32>
    %c0_1 = arith.constant 0 : index
    %c0_2 = arith.constant 0 : index
    %1 = vector.load %arg2[%c0_1, %c0_2] : memref<10x240xf32, #tpu.memory_space<vmem>>, vector<10x240xf32>
    %cst = arith.constant dense<0.000000e+00> : vector<1x240xf32>
    %2 = tpu.matmul %0, %1, %cst {dimension_numbers = #tpu.dot_dimension_numbers<[1], [0], [0], [1], [0, 0, 1, 1], [], []>} : vector<1x10xf32>, vector<10x240xf32>, vector<1x240xf32> -> vector<1x240xf32>
    %c0_3 = arith.constant 0 : index
    %c0_4 = arith.constant 0 : index
    %3 = vector.load %arg3[%c0_3, %c0_4] : memref<1x240xf32, #tpu.memory_space<vmem>>, vector<1x240xf32>
    %4 = arith.addf %2, %3 : vector<1x240xf32>
    %5 = arith.negf %4 : vector<1x240xf32>
    %6 = math.exp %5 : vector<1x240xf32>
    %cst_5 = arith.constant 1.000000e+00 : f32
    %7 = vector.broadcast %cst_5 : f32 to vector<1x240xf32>
    %8 = arith.addf %7, %6 : vector<1x240xf32>
    %9 = arith.divf %7, %8 : vector<1x240xf32>
    %c0_6 = arith.constant 0 : index
    %c0_7 = arith.constant 0 : index
    %10 = vector.load %arg4[%c0_6, %c0_7] : memref<40x240xf32, #tpu.memory_space<vmem>>, vector<40x240xf32>
    %11 = vector.broadcast %9 : vector<1x240xf32> to vector<40x240xf32>
    %12 = arith.mulf %10, %11 : vector<40x240xf32>
    %c0_8 = arith.constant 0 : index
    %c0_9 = arith.constant 0 : index
    %13 = vector.load %arg5[%c0_8, %c0_9] : memref<240x128xf32, #tpu.memory_space<vmem>>, vector<240x128xf32>
    %cst_10 = arith.constant dense<0.000000e+00> : vector<40x128xf32>
    %14 = tpu.matmul %12, %13, %cst_10 {dimension_numbers = #tpu.dot_dimension_numbers<[1], [0], [0], [1], [0, 0, 1, 1], [], []>} : vector<40x240xf32>, vector<240x128xf32>, vector<40x128xf32> -> vector<40x128xf32>
    %c0_11 = arith.constant 0 : index
    %c0_12 = arith.constant 0 : index
    %15 = vector.load %arg6[%c0_11, %c0_12] : memref<40x128xf32, #tpu.memory_space<vmem>>, vector<40x128xf32>
    tpu.vector_store %arg6[%c0_11, %c0_12], %14 {strides = array<i32>} : memref<40x128xf32, #tpu.memory_space<vmem>>, vector<40x128xf32>,
    return
  }
  func.func @transform_0(%arg0: i32) -> (i32, i32) {
    %c0_i32 = arith.constant 0 : i32
    %c0_i32_0 = arith.constant 0 : i32
    %c0_i32_1 = arith.constant 0 : i32
    return %c0_i32, %c0_i32_0 : i32, i32
  }
  func.func @transform_1(%arg0: i32) -> (i32, i32) {
    %c0_i32 = arith.constant 0 : i32
    %c0_i32_0 = arith.constant 0 : i32
    %c0_i32_1 = arith.constant 0 : i32
    return %c0_i32, %c0_i32_0 : i32, i32
  }
  func.func @transform_2(%arg0: i32) -> (i32, i32) {
    %c0_i32 = arith.constant 0 : i32
    %c0_i32_0 = arith.constant 0 : i32
    %c0_i32_1 = arith.constant 0 : i32
    return %c0_i32, %c0_i32_0 : i32, i32
  }
  func.func @transform_3(%arg0: i32) -> (i32, i32) {
    %c0_i32 = arith.constant 0 : i32
    %c0_i32_0 = arith.constant 0 : i32
    %c0_i32_1 = arith.constant 0 : i32
    return %c0_i32, %c0_i32_0 : i32, i32
  }
  func.func @transform_4(%arg0: i32) -> (i32, i32) {
    %c0_i32 = arith.constant 0 : i32
    %c0_i32_0 = arith.constant 0 : i32
    return %c0_i32, %arg0 : i32, i32
  }
  func.func @transform_5(%arg0: i32) -> (i32, i32) {
    %c0_i32 = arith.constant 0 : i32
    %c0_i32_0 = arith.constant 0 : i32
    return %c0_i32, %arg0 : i32, i32
  }
}

</mosaic_0001>

<bundles_post_ra>
// kernel: se_block.1
= control target key start
LH: loop header
LB: loop body
LE: loop exit
PB: predicated region body
PF: predicated region fallthrough
CT: control target
= control target key end

     0   :  { %s957_s18 = smov 0   ;;  %s959_s19 = smov 0   ;;  %s1200_s0 = inlined_call_operand.vmem [shape: f32[1,10], index: 0, kind: input, shape index: {}]   ;;  %s1201_s1 = inlined_call_operand.vmem [shape: f32[10,240], index: 1, kind: input, shape index: {}]   ;;  %s1202_s2 = inlined_call_operand.vmem [shape: f32[1,240], index: 2, kind: input, shape index: {}]   ;;  %s1203_s3 = inlined_call_operand.vmem [shape: f32[40,240], index: 3, kind: input, shape index: {}]   ;;  %s1204_s4 = inlined_call_operand.vmem [shape: f32[240,256], index: 4, kind: input, shape index: {}]   ;;  %s1205_s5 = inlined_call_operand.vmem [shape: f32[40,256], index: 5, kind: output, shape index: {}]  }
   0x1   :  { %s961_s20 = smov 0  }
   0x2 LB: > { %s762_s21 = sadd.s32 4294967295, %s922_s20   ;;  %s974_s22 = sadd.s32 1, %s922_s20   ;;  %s922_s20 = sphi %s961_s20, %s1209_s20   ;;  %s918_s19 = sphi %s959_s19, %s1208_s19   ;;  %s914_s18 = sphi %s957_s18, %s1207_s18  }
   0x3   : > { %s103_s23 = ssub.s32 %s922_s20, %s974_s22  ;;  %s106_s24 = sadd.s32 1, %s918_s19 }
   0x4   : > { %p104_p0 = scmp.eq.s32.totalorder %s103_s23, 0  ;;  %p113_p1 = scmp.ne.s32.totalorder %s918_s19, %s914_s18 }
   0x5   : > { %p114_p2 = scmp.eq.s32.totalorder %s922_s20, 0  ;;  %p143_p3 = scmp.eq.s32.totalorder %s762_s21, 1 }
   0x6   : > { %s985_s25 = scalar_select %p104_p0, %s918_s19, %s106_s24  }
   0x7   : > { %p115_p4 = por %p114_p2, %p113_p1  ;;  %p987_p5 = por %p143_p3, %p113_p1 }
   0x8   : > { %p765_p6 = scmp.ge.s32.totalorder %s922_s20, 2 }
   0xa   : > { %177 = sbr.rel (%p765_p6) target bundleno = 36 (0x24), region = 32 }
  0x11   : > { %180 = sbr.rel (!%p115_p4) target bundleno = 36 (0x24), region = 36  ;;  %s182_s27 = sand.u32 (%p115_p4), 1, %s918_s19  }
  0x12   : > { %s766_s28 = sshll.u32 (%p115_p4), %s922_s20, 3  ;;  %s862_s29 = smul.u32 (%p115_p4), 240, %s182_s27 }
  0x13   : > { %s997_s7 = scalar_lea.vmem (%p115_p4), %s1204_s4, %s766_s28 }
  0x14   : > { %v272_v0 = vld [vmem:[%s997_s7] sm:$0xff] (%p115_p4)  ;;  %v274_v1 = vld [vmem:[%s997_s7 + $0x10] sm:$0xff] (%p115_p4)  ;;  %s1005_s8 = scalar_lea.vmem (%p115_p4), [#allocation2], %s862_s29 }
  0x15   : > { %v276_v2 = vld [vmem:[%s997_s7 + $0x20] sm:$0xff] (%p115_p4)  ;;  %v278_v3 = vld [vmem:[%s997_s7 + $0x30] sm:$0xff] (%p115_p4)  ;;  %273 = vst [vmem:[%s1005_s8] sm:$0xff] (%p115_p4), %v272_v0  ;;  %275 = vst [vmem:[%s1005_s8 + $0x8] sm:$0xff] (%p115_p4), %v274_v1 }
  0x16   : > { %v280_v4 = vld [vmem:[%s997_s7 + $0x40] sm:$0xff] (%p115_p4)  ;;  %v282_v5 = vld [vmem:[%s997_s7 + $0x50] sm:$0xff] (%p115_p4)  ;;  %277 = vst [vmem:[%s1005_s8 + $0x10] sm:$0xff] (%p115_p4), %v276_v2  ;;  %279 = vst [vmem:[%s1005_s8 + $0x18] sm:$0xff] (%p115_p4), %v278_v3 }
  0x17   : > { %281 = vst [vmem:[%s1005_s8 + $0x20] sm:$0xff] (%p115_p4), %v280_v4  ;;  %283 = vst [vmem:[%s1005_s8 + $0x28] sm:$0xff] (%p115_p4), %v282_v5  ;;  %v284_v6 = vld [vmem:[%s997_s7 + $0x60] sm:$0xff] (%p115_p4)  ;;  %v286_v7 = vld [vmem:[%s997_s7 + $0x70] sm:$0xff] (%p115_p4) }
  0x18   : > { %v288_v8 = vld [vmem:[%s997_s7 + $0x80] sm:$0xff]  ;;  %285 = vst [vmem:[%s1005_s8 + $0x30] sm:$0xff] %v284_v6  ;;  %287 = vst [vmem:[%s1005_s8 + $0x38] sm:$0xff] %v286_v7  ;;  %v290_v9 = vld [vmem:[%s997_s7 + $0x90] sm:$0xff] }
  0x19   : > { %289 = vst [vmem:[%s1005_s8 + $0x40] sm:$0xff] %v288_v8  ;;  %v292_v10 = vld [vmem:[%s997_s7 + $0xa0] sm:$0xff]  ;;  %v294_v11 = vld [vmem:[%s997_s7 + $0xb0] sm:$0xff]  ;;  %291 = vst [vmem:[%s1005_s8 + $0x48] sm:$0xff] %v290_v9 }
  0x1a   : > { %293 = vst [vmem:[%s1005_s8 + $0x50] sm:$0xff] %v292_v10  ;;  %295 = vst [vmem:[%s1005_s8 + $0x58] sm:$0xff] %v294_v11  ;;  %v296_v12 = vld [vmem:[%s997_s7 + $0xc0] sm:$0xff]  ;;  %v298_v13 = vld [vmem:[%s997_s7 + $0xd0] sm:$0xff] }
  0x1b   : > { %v300_v14 = vld [vmem:[%s997_s7 + $0xe0] sm:$0xff]  ;;  %297 = vst [vmem:[%s1005_s8 + $0x60] sm:$0xff] %v296_v12  ;;  %299 = vst [vmem:[%s1005_s8 + $0x68] sm:$0xff] %v298_v13  ;;  %v302_v15 = vld [vmem:[%s997_s7 + $0xf0] sm:$0xff] }
  0x1c   : > { %301 = vst [vmem:[%s1005_s8 + $0x70] sm:$0xff] %v300_v14  ;;  %v304_v16 = vld [vmem:[%s997_s7 + $0x100] sm:$0xff]  ;;  %v306_v17 = vld [vmem:[%s997_s7 + $0x110] sm:$0xff]  ;;  %303 = vst [vmem:[%s1005_s8 + $0x78] sm:$0xff] %v302_v15 }
  0x1d   : > { %305 = vst [vmem:[%s1005_s8 + $0x80] sm:$0xff] %v304_v16  ;;  %307 = vst [vmem:[%s1005_s8 + $0x88] sm:$0xff] %v306_v17  ;;  %v308_v18 = vld [vmem:[%s997_s7 + $0x120] sm:$0xff]  ;;  %v310_v19 = vld [vmem:[%s997_s7 + $0x130] sm:$0xff] }
  0x1e   : > { %v312_v20 = vld [vmem:[%s997_s7 + $0x140] sm:$0xff]  ;;  %309 = vst [vmem:[%s1005_s8 + $0x90] sm:$0xff] %v308_v18  ;;  %311 = vst [vmem:[%s1005_s8 + $0x98] sm:$0xff] %v310_v19  ;;  %v314_v21 = vld [vmem:[%s997_s7 + $0x150] sm:$0xff] }
  0x1f   : > { %313 = vst [vmem:[%s1005_s8 + $0xa0] sm:$0xff] %v312_v20  ;;  %v316_v22 = vld [vmem:[%s997_s7 + $0x160] sm:$0xff]  ;;  %v318_v23 = vld [vmem:[%s997_s7 + $0x170] sm:$0xff]  ;;  %315 = vst [vmem:[%s1005_s8 + $0xa8] sm:$0xff] %v314_v21 }
  0x20   : > { %317 = vst [vmem:[%s1005_s8 + $0xb0] sm:$0xff] %v316_v22  ;;  %319 = vst [vmem:[%s1005_s8 + $0xb8] sm:$0xff] %v318_v23  ;;  %v320_v24 = vld [vmem:[%s997_s7 + $0x180] sm:$0xff]  ;;  %v322_v25 = vld [vmem:[%s997_s7 + $0x190] sm:$0xff] }
  0x21   : > { %v324_v26 = vld [vmem:[%s997_s7 + $0x1a0] sm:$0xff]  ;;  %321 = vst [vmem:[%s1005_s8 + $0xc0] sm:$0xff] %v320_v24  ;;  %323 = vst [vmem:[%s1005_s8 + $0xc8] sm:$0xff] %v322_v25  ;;  %v326_v27 = vld [vmem:[%s997_s7 + $0x1b0] sm:$0xff] }
  0x22   : > { %325 = vst [vmem:[%s1005_s8 + $0xd0] sm:$0xff] %v324_v26  ;;  %v328_v28 = vld [vmem:[%s997_s7 + $0x1c0] sm:$0xff]  ;;  %v330_v29 = vld [vmem:[%s997_s7 + $0x1d0] sm:$0xff]  ;;  %327 = vst [vmem:[%s1005_s8 + $0xd8] sm:$0xff] %v326_v27 }
  0x23   : > { %329 = vst [vmem:[%s1005_s8 + $0xe0] sm:$0xff] %v328_v28  ;;  %331 = vst [vmem:[%s1005_s8 + $0xe8] sm:$0xff] %v330_v29 }
  0x24 PF: > { %p767_p7 = scmp.ge.s32.totalorder %s922_s20, 1  ;;  %p336_p8 = scmp.lt.s32.totalorder %s922_s20, 3 }
  0x26   : > { %p337_p9 = pnand %p767_p7, %p336_p8 }
  0x27   : > { %v371_v30 = vld [vmem:[%s1201_s1 + $0x8] sm:$0xff] (!%p337_p9)  ;;  %v373_v31 = vld [vmem:[%s1201_s1 + $0x18] sm:$0x3] (!%p337_p9)  ;;  %vm390_vm0 = vcmask (!%p337_p9), 1041408   ;;  %v370_v32 = vld [vmem:[%s1201_s1] sm:$0xff] (!%p337_p9)  ;;  %vm924_vm1 = vmmov (!%p337_p9), 1   ;;  %v376_v20 = vlaneseq (!%p337_p9) }
  0x28   : > { %340 = sbr.rel (%p337_p9) target bundleno = 521 (0x209), region = 74  ;;  %v781_v33 = vpack.c.bf16 (!%p337_p9), %v373_v31, %v371_v30  ;;  %vm782_vm2 = vmpackc.low (!%p337_p9), %vm390_vm0, %vm924_vm1  ;;  %v372_v34 = vld [vmem:[%s1201_s1 + $0x10] sm:$0x3] (!%p337_p9)  ;;  %v925_v36 = vmov (!%p337_p9), 0.0   ;;  %s343_s17 = sand.u32 (!%p337_p9), 1, %s914_s18   ;;  %v926_v37 = vmov (!%p337_p9), 0.0|0.0  }
  0x29   : > { %v784_v35 = vpack.c.bf16 (!%p337_p9), %v372_v34, %v370_v32  ;;  %461 = vmatprep.mubr.f32.mxu0 (!%p337_p9), %v925_v36  ;;  %832 = vmatprep.subr.bf16.mxu1 (!%p337_p9), %v926_v37  ;;  %s863_s23 = smul.u32 (!%p337_p9), 240, %s343_s17  ;;  %v369_v38 = vld [vmem:[%s1200_s0] sm:$0x1] (!%p337_p9)  ;;  %vm386_vm3 = vcmask (!%p337_p9), 80896   ;;  %v377_v21 = vshrl.u32 (!%p337_p9), %v376_v20, 7  ;;  %vm538_vm4 = vcmask (!%p337_p9), 916480  }
  0x2a   : > { %783 = vmatprep.subr.msk.bf16.mxu0 (!%p337_p9), %vm782_vm2, %v781_v33  ;;  %v374_v23 = vld [vmem:[%s1202_s2] sm:$0x3] (!%p337_p9)  ;;  %s864_s9 = smul.u32 (!%p337_p9), 40, %s343_s17 }
  0x2b   : > { %786 = vmatpush1.bf16.msk.msra.mxu0 (!%p337_p9), %vm782_vm2, %v784_v35  ;;  %s1083_s28 = scalar_lea.vmem (!%p337_p9), [#allocation2], %s863_s23  ;;  %v378_v22 = vsub.s32 (!%p337_p9), 0, %v377_v21  ;;  %v382_v24 = vsub.s32 (!%p337_p9), 1, %v377_v21 }
  0x2c   : > { %787 = vmatprep.subr.bf16.mxu0 (!%p337_p9), %v926_v37  ;;  %v508_v39 = vld [vmem:[%s1083_s28] sm:$0xff] (!%p337_p9)  ;;  %v509_v40 = vld [vmem:[%s1083_s28 + $0x8] sm:$0xff] (!%p337_p9)  ;;  %v510_v41 = vld [vmem:[%s1083_s28 + $0x10] sm:$0xff] (!%p337_p9)  ;;  %s368_s10 = scalar_lea.vmem (!%p337_p9), [#allocation3], %s864_s9 }
  0x2d   : > { %v788_v42 = vpack.c.bf16 (!%p337_p9), %v509_v40, %v508_v39  ;;  %v511_v43 = vld [vmem:[%s1083_s28 + $0x18] sm:$0xff] (!%p337_p9)  ;;  %v512_v45 = vld [vmem:[%s1083_s28 + $0x20] sm:$0xff] (!%p337_p9)  ;;  %v513_v46 = vld [vmem:[%s1083_s28 + $0x28] sm:$0xff] (!%p337_p9)  ;;  %v379_v25 = vrot.slane (!%p337_p9), %v374_v23, %v378_v22  ;;  %v383_v26 = vrot.slane (!%p337_p9), %v374_v23, %v382_v24 }
  0x2e   : > { %770 = vmatmul.mubr.msk.f32.vlgmr.msra.gmra.mrb[0].mxu0 (!%p337_p9), %vm386_vm3, %v369_v38  ;;  %v791_v44 = vpack.c.bf16 (!%p337_p9), %v511_v43, %v510_v41  ;;  %v794_v47 = vpack.c.bf16 (!%p337_p9), %v513_v46, %v512_v45  ;;  %v514_v48 = vld [vmem:[%s1083_s28 + $0x30] sm:$0xff] (!%p337_p9)  ;;  %v515_v49 = vld [vmem:[%s1083_s28 + $0x38] sm:$0xff] (!%p337_p9)  ;;  %v516_v51 = vld [vmem:[%s1083_s28 + $0x40] sm:$0xff] (!%p337_p9) }
  0x2f   : > { %789 = vmatpush1.bf16.msra.mxu0 %v788_v42  ;;  %847 = vmatpush1.bf16.msra.mxu1 %v788_v42  ;;  %v797_v50 = vpack.c.bf16 %v515_v49, %v514_v48  ;;  %v517_v52 = vld [vmem:[%s1083_s28 + $0x48] sm:$0xff]  ;;  %v518_v54 = vld [vmem:[%s1083_s28 + $0x50] sm:$0xff]  ;;  %v519_v55 = vld [vmem:[%s1083_s28 + $0x58] sm:$0xff]  ;;  %s778_s18 = sshll.u32 (%p987_p5), %s762_s21, 3 }
  0x30   : > { %790 = vmatprep.subr.bf16.mxu0 %v926_v37  ;;  %833 = vmatprep.subr.bf16.mxu1 %v926_v37  ;;  %v800_v53 = vpack.c.bf16 %v517_v52, %v516_v51  ;;  %v803_v56 = vpack.c.bf16 %v519_v55, %v518_v54  ;;  %v520_v57 = vld [vmem:[%s1083_s28 + $0x60] sm:$0xff]  ;;  %v521_v58 = vld [vmem:[%s1083_s28 + $0x68] sm:$0xff]  ;;  %v522_v60 = vld [vmem:[%s1083_s28 + $0x70] sm:$0xff]  ;;  %s657_s12 = scalar_lea.vmem (%p987_p5), %s1205_s5, %s778_s18 }
  0x31   : > { %v806_v59 = vpack.c.bf16 %v521_v58, %v520_v57  ;;  %v523_v61 = vld [vmem:[%s1083_s28 + $0x78] sm:$0xff]  ;;  %v524_v63 = vld [vmem:[%s1083_s28 + $0x80] sm:$0xff]  ;;  %v525_v0 = vld [vmem:[%s1083_s28 + $0x88] sm:$0xff] }
  0x32   : > { %v809_v62 = vpack.c.bf16 %v523_v61, %v522_v60  ;;  %v812_v1 = vpack.c.bf16 %v525_v0, %v524_v63  ;;  %v526_v2 = vld [vmem:[%s1083_s28 + $0x90] sm:$0xff]  ;;  %v527_v3 = vld [vmem:[%s1083_s28 + $0x98] sm:$0xff]  ;;  %v528_v5 = vld [vmem:[%s1083_s28 + $0xa0] sm:$0xff] }
  0x33   : > { %792 = vmatpush1.bf16.msra.mxu0 %v791_v44  ;;  %848 = vmatpush1.bf16.msra.mxu1 %v791_v44  ;;  %v815_v4 = vpack.c.bf16 %v527_v3, %v526_v2  ;;  %v529_v6 = vld [vmem:[%s1083_s28 + $0xa8] sm:$0xff]  ;;  %v530_v8 = vld [vmem:[%s1083_s28 + $0xb0] sm:$0xff]  ;;  %v531_v9 = vld [vmem:[%s1083_s28 + $0xb8] sm:$0xff] }
  0x34   : > { %793 = vmatprep.subr.bf16.mxu0 %v926_v37  ;;  %834 = vmatprep.subr.bf16.mxu1 %v926_v37  ;;  %v818_v7 = vpack.c.bf16 %v529_v6, %v528_v5  ;;  %v821_v10 = vpack.c.bf16 %v531_v9, %v530_v8  ;;  %v532_v11 = vld [vmem:[%s1083_s28 + $0xc0] sm:$0xff]  ;;  %v533_v12 = vld [vmem:[%s1083_s28 + $0xc8] sm:$0xff]  ;;  %v534_v14 = vld [vmem:[%s1083_s28 + $0xd0] sm:$0xff] }
  0x35   : > { %v824_v13 = vpack.c.bf16 %v533_v12, %v532_v11  ;;  %v535_v15 = vld [vmem:[%s1083_s28 + $0xd8] sm:$0xff]  ;;  %v536_v17 = vld [vmem:[%s1083_s28 + $0xe0] sm:$0xff]  ;;  %v537_v18 = vld [vmem:[%s1083_s28 + $0xe8] sm:$0xff] }
  0x36   : > { %v827_v16 = vpack.c.bf16 %v535_v15, %v534_v14  ;;  %v830_v19 = vpack.c.bf16 %v537_v18, %v536_v17  ;;  %v481_v40 = vld [vmem:[%s1203_s3 + $0x8] sm:$0xff]  ;;  %v480_v43 = vld [vmem:[%s1203_s3] sm:$0xff]  ;;  %v483_v45 = vld [vmem:[%s1203_s3 + $0x18] sm:$0xff] }
  0x37   : > { %795 = vmatpush1.bf16.msra.mxu0 %v794_v47  ;;  %849 = vmatpush1.bf16.msra.mxu1 %v794_v47  ;;  %v485_v41 = vld [vmem:[%s1203_s3 + $0x28] sm:$0xff]  ;;  %v484_v44 = vld [vmem:[%s1203_s3 + $0x20] sm:$0xff]  ;;  %v487_v46 = vld [vmem:[%s1203_s3 + $0x38] sm:$0xff] }
  0x38   : > { %796 = vmatprep.subr.bf16.mxu0 %v926_v37  ;;  %835 = vmatprep.subr.bf16.mxu1 %v926_v37  ;;  %v486_v54 = vld [vmem:[%s1203_s3 + $0x30] sm:$0xff]  ;;  %v489_v55 = vld [vmem:[%s1203_s3 + $0x48] sm:$0xff] }
  0x3b   : > { %798 = vmatpush1.bf16.msra.mxu0 %v797_v50  ;;  %850 = vmatpush1.bf16.msra.mxu1 %v797_v50 }
  0x3c   : > { %799 = vmatprep.subr.bf16.mxu0 %v926_v37  ;;  %836 = vmatprep.subr.bf16.mxu1 %v926_v37 }
  0x3f   : > { %801 = vmatpush1.bf16.msra.mxu0 %v800_v53  ;;  %851 = vmatpush1.bf16.msra.mxu1 %v800_v53  ;;  %v482_v53 = vld [vmem:[%s1203_s3 + $0x10] sm:$0xff] }
  0x40   : > { %802 = vmatprep.subr.bf16.mxu0 %v926_v37  ;;  %837 = vmatprep.subr.bf16.mxu1 %v926_v37 }
  0x43   : > { %804 = vmatpush1.bf16.msra.mxu0 %v803_v56  ;;  %852 = vmatpush1.bf16.msra.mxu1 %v803_v56 }
  0x44   : > { %805 = vmatprep.subr.bf16.mxu0 %v926_v37  ;;  %838 = vmatprep.subr.bf16.mxu1 %v926_v37 }
  0x47   : > { %807 = vmatpush1.bf16.msra.mxu0 %v806_v59  ;;  %853 = vmatpush1.bf16.msra.mxu1 %v806_v59  ;;  %v488_v59 = vld [vmem:[%s1203_s3 + $0x40] sm:$0xff] }
  0x48   : > { %808 = vmatprep.subr.bf16.mxu0 %v926_v37  ;;  %839 = vmatprep.subr.bf16.mxu1 %v926_v37 }
  0x4b   : > { %810 = vmatpush1.bf16.msra.mxu0 %v809_v62  ;;  %854 = vmatpush1.bf16.msra.mxu1 %v809_v62 }
  0x4c   : > { %811 = vmatprep.subr.bf16.mxu0 %v926_v37  ;;  %840 = vmatprep.subr.bf16.mxu1 %v926_v37 }
  0x4f   : > { %813 = vmatpush1.bf16.msra.mxu0 %v812_v1  ;;  %855 = vmatpush1.bf16.msra.mxu1 %v812_v1 }
  0x50   : > { %814 = vmatprep.subr.bf16.mxu0 %v926_v37  ;;  %841 = vmatprep.subr.bf16.mxu1 %v926_v37 }
  0x53   : > { %816 = vmatpush1.bf16.msra.mxu0 %v815_v4  ;;  %856 = vmatpush1.bf16.msra.mxu1 %v815_v4 }
  0x54   : > { %817 = vmatprep.subr.bf16.mxu0 %v926_v37  ;;  %842 = vmatprep.subr.bf16.mxu1 %v926_v37 }
  0x57   : > { %819 = vmatpush1.bf16.msra.mxu0 %v818_v7  ;;  %857 = vmatpush1.bf16.msra.mxu1 %v818_v7 }
  0x58   : > { %820 = vmatprep.subr.bf16.mxu0 %v926_v37  ;;  %843 = vmatprep.subr.bf16.mxu1 %v926_v37 }
  0x5b   : > { %822 = vmatpush1.bf16.msra.mxu0 %v821_v10  ;;  %858 = vmatpush1.bf16.msra.mxu1 %v821_v10 }
  0x5c   : > { %823 = vmatprep.subr.bf16.mxu0 %v926_v37  ;;  %844 = vmatprep.subr.bf16.mxu1 %v926_v37 }
  0x5f   : > { %825 = vmatpush1.bf16.msra.mxu0 %v824_v13  ;;  %859 = vmatpush1.bf16.msra.mxu1 %v824_v13 }
  0x60   : > { %826 = vmatprep.subr.bf16.mxu0 %v926_v37  ;;  %845 = vmatprep.subr.bf16.mxu1 %v926_v37 }
  0x63   : > { %828 = vmatpush1.bf16.msra.mxu0 %v827_v16  ;;  %860 = vmatpush1.bf16.msra.mxu1 %v827_v16 }
  0x64   : > { %829 = vmatprep.subr.bf16.mxu0 %v926_v37  ;;  %846 = vmatprep.subr.bf16.mxu1 %v926_v37 }
  0x67   : > { %831 = vmatpush1.bf16.msra.mxu0 %v830_v19  ;;  %861 = vmatpush1.bf16.msra.mxu1 %v830_v19 }
 0x101   : > { %v463_v27 = vpop.f32.mrb[0].mxu0 }
 0x102   : > { %v464_v28 = vadd.f32 %v463_v27, %v379_v25  ;;  %v465_v29 = vpop.f32.mrb[1].mxu0 }
 0x103   : > { %v466_v30 = vadd.f32 %v465_v29, %v383_v26 }
 0x104   : > { %v771_v31 = vmul.f32 -1.442695, %v464_v28 }
 0x105   : > { %v772_v32 = vmul.f32 -1.442695, %v466_v30 }
 0x106   : > { %892 = vpow2.f32 %v771_v31 }
 0x107   : > { %894 = vpow2.f32 %v772_v32 }
 0x110   : > { %v893_v33 = vpop.eup %892 }
 0x111   : > { %v895_v34 = vpop.eup %894  ;;  %v474_v35 = vadd.f32 1.0, %v893_v33 }
 0x112   : > { %v475_v36 = vadd.f32 1.0, %v895_v34 }
 0x113   : > { %896 = vrcp.f32 %v474_v35 }
 0x114   : > { %898 = vrcp.f32 %v475_v36 }
 0x11d   : > { %v897_v37 = vpop.eup %896 }
 0x11e   : > { %v899_v38 = vpop.eup %898  ;;  %v493_v39 = vrot.slane %v897_v37, %v378_v22 }
 0x11f   : > { %v497_v42 = vrot.slane %v899_v38, %v378_v22 }
 0x120   : > { %v498_v49 = vmul.f32 %v493_v39, %v480_v43  ;;  %v502_v50 = vmul.f32 %v493_v39, %v484_v44  ;;  %v500_v56 = vmul.f32 %v493_v39, %v482_v53  ;;  %v504_v57 = vmul.f32 %v493_v39, %v486_v54 }
 0x121   : > { %v499_v47 = vmul.f32 %v497_v42, %v481_v40  ;;  %v503_v48 = vmul.f32 %v497_v42, %v485_v41  ;;  %v501_v51 = vmul.f32 %v497_v42, %v483_v45  ;;  %v505_v52 = vmul.f32 %v497_v42, %v487_v46 }
 0x122   : > { %v507_v58 = vmul.f32 %v497_v42, %v489_v55  ;;  %v506_v60 = vmul.f32 %v493_v39, %v488_v59 }
 0x123   : > { %773 = vmatprep.mubr.msk.f32.mxu0 %vm538_vm4, %v499_v47  ;;  %775 = vmatprep.mubr.msk.f32.mxu1 %vm538_vm4, %v503_v48 }
 0x124   : > { %619 = vmatmul.mubr.f32.vlgmr.msra.gmra.mrb[2].mxu0 %v498_v49  ;;  %629 = vmatmul.mubr.f32.vlgmr.msra.gmra.mrb[0].mxu1 %v502_v50 }
 0x125   : > { %774 = vmatprep.mubr.msk.f32.mxu0 %vm538_vm4, %v501_v51  ;;  %776 = vmatprep.mubr.msk.f32.mxu1 %vm538_vm4, %v505_v52 }
 0x128   : > { %624 = vmatmul.mubr.f32.gmra.mrb[4].mxu0 %v500_v56  ;;  %634 = vmatmul.mubr.f32.gmra.mrb[2].mxu1 %v504_v57 }
 0x129   : > { %777 = vmatprep.mubr.msk.f32.mxu1 %vm538_vm4, %v507_v58 }
 0x12c   : > { %639 = vmatmul.mubr.f32.gmra.mrb[4].mxu1 %v506_v60 }
 0x1f7   : > { %v620_v61 = vpop.f32.mrb[2].mxu0  ;;  %v630_v62 = vpop.f32.mrb[0].mxu1 }
 0x1f8   : > { %644 = vst [vmem:[%s368_s10] sm:$0xff] %v620_v61  ;;  %646 = vst [vmem:[%s368_s10 + $0x10] sm:$0xff] %v630_v62  ;;  %v622_v63 = vpop.f32.mrb[3].mxu0  ;;  %v632_v0 = vpop.f32.mrb[1].mxu1 }
 0x1fa   : > { %655 = sbr.rel (!%p987_p5) target bundleno = 521 (0x209), region = 82 }
 0x1fb   : > { %v625_v1 = vpop.f32.mrb[4].mxu0  ;;  %v635_v2 = vpop.f32.mrb[2].mxu1 }
 0x1fc   : > { %645 = vst [vmem:[%s368_s10 + $0x8] sm:$0xff] %v625_v1  ;;  %647 = vst [vmem:[%s368_s10 + $0x18] sm:$0xff] %v635_v2  ;;  %v627_v3 = vpop.f32.mrb[5].mxu0  ;;  %v637_v4 = vpop.f32.mrb[3].mxu1 }
 0x1ff   : > { %v640_v5 = vpop.f32.mrb[4].mxu1  ;;  %v693_v7 = vld [vmem:[%s368_s10] sm:$0xff] (%p987_p5)  ;;  %v697_v9 = vld [vmem:[%s368_s10 + $0x10] sm:$0xff] (%p987_p5) }
 0x200   : > { %648 = vst [vmem:[%s368_s10 + $0x20] sm:$0xff] %v640_v5  ;;  %v642_v6 = vpop.f32.mrb[5].mxu1  ;;  %694 = vst [vmem:[%s657_s12] sm:$0xff] (%p987_p5), %v693_v7 }
 0x201   : > { %698 = vst [vmem:[%s657_s12 + $0x20] sm:$0xff] %v697_v9 }
 0x203   : > { %v695_v8 = vld [vmem:[%s368_s10 + $0x8] sm:$0xff]  ;;  %v699_v10 = vld [vmem:[%s368_s10 + $0x18] sm:$0xff] }
 0x204   : > { %696 = vst [vmem:[%s657_s12 + $0x10] sm:$0xff] %v695_v8  ;;  %700 = vst [vmem:[%s657_s12 + $0x30] sm:$0xff] %v699_v10 }
 0x207   : > { %v701_v11 = vld [vmem:[%s368_s10 + $0x20] sm:$0xff] }
 0x208   : > { %702 = vst [vmem:[%s657_s12 + $0x40] sm:$0xff] %v701_v11 }
 0x209 PF: > { %p12_p10 = scmp.ge.s32.totalorder %s974_s22, 4   ;;  %s1207_s18 = smov %s918_s19 }
 0x20a   : > { %s1208_s19 = smov %s985_s25  ;;  %s1209_s20 = smov %s974_s22 }
 0x20b   :  { %14 = sbr.rel (!%p12_p10) target bundleno = 2 (0x2), region = 151 }

</bundles_post_ra>
